<compile_context>
chip_gen: v7x
topology: tpu7x:2x2x1
jax: 0.10.0
libtpu: 0.0.40
codegen_flags: <defaults>
</compile_context>

<pallas_src>
import functools

import jax
import jax.numpy as jnp
import numpy as np
from jax.experimental import pallas as pl
from jax.experimental.pallas import tpu as pltpu


def _round_up(x, m):
    return ((x + m - 1) // m) * m


@functools.lru_cache(maxsize=None)
def _vmem_capacity_bytes():
    try:
        return int(pltpu.get_tpu_info().vmem_capacity_bytes)
    except Exception:
        return 64 * 1024 * 1024  # conservative: v7x per-TC VMEM


@functools.lru_cache(maxsize=None)
def _tm_cap():
    # 128 MiB VMEM parts (v5e/v6e, 1 TC) -> bigger tiles amortize per-step
    # overhead; 64 MiB (v7x, 2 TCs) -> keep 512 and favour >=2 grid steps.
    return 1024 if _vmem_capacity_bytes() >= 100 * 1024 * 1024 else 512


# --------------------------------------------------------------------------- #
# Kernel
# --------------------------------------------------------------------------- #
def _mlp_kernel(x_ref, w1_ref, b1_ref, w2_ref, b2_ref, w3_ref, b3_ref, o_ref):
    """Fused 3-layer MLP on one batch tile: relu(relu(x@W1+b1)@W2+b2)@W3+b3."""
    # bf16 MXU operands, f32 accumulation; bias add + ReLU in f32 on the VPU.
    h = jnp.dot(x_ref[...], w1_ref[...], preferred_element_type=jnp.float32)
    h = jnp.maximum(h + b1_ref[...], 0.0).astype(jnp.bfloat16)
    h = jnp.dot(h, w2_ref[...], preferred_element_type=jnp.float32)
    h = jnp.maximum(h + b2_ref[...], 0.0).astype(jnp.bfloat16)
    out = jnp.dot(h, w3_ref[...], preferred_element_type=jnp.float32)
    # output_activation=None in the reference module -> no final activation.
    o_ref[...] = (out + b3_ref[...]).astype(o_ref.dtype)


# --------------------------------------------------------------------------- #
# pallas_call wrapper
# --------------------------------------------------------------------------- #
@functools.partial(jax.jit, static_argnames=("tm", "single_buffer_params"))
def mlp_forward(x, w1, b1, w2, b2, w3, b3, *, tm, single_buffer_params):
    """x: (B_pad, D_in_pad) bf16 with B_pad % tm == 0 and dims % 128 == 0.

    Weights wN: (d_in_pad, d_out_pad) bf16; biases bN: (1, d_out_pad) f32.
    Returns (B_pad, D_out_pad) bf16.
    """
    bp, d_in = x.shape
    h1 = w1.shape[1]
    h2 = w2.shape[1]
    d_out = w3.shape[1]
    grid = (bp // tm,)

    params = (w1, b1, w2, b2, w3, b3)
    param_bytes = sum(int(a.size) * a.dtype.itemsize for a in params)
    param_buf = 1 if single_buffer_params else 2

    # VMEM budget: (single/double)-buffered params + double-buffered x/out
    # tiles + f32 intermediates + their bf16 copies + compiler scratch margin.
    io_tile_bytes = tm * d_in * 2 + tm * d_out * 2                 # bf16 in/out
    inter_bytes = tm * (h1 + h2) * (4 + 2) + tm * d_out * 4        # f32 + bf16
    needed = (param_buf * param_bytes + 2 * io_tile_bytes + inter_bytes
              + (1 << 20))
    vmem_cap = max(_vmem_capacity_bytes() - 8 * 1024 * 1024, 16 * 1024 * 1024)
    vmem_limit = int(min(max(needed * 3 // 2, 16 * 1024 * 1024), vmem_cap))

    flops = 2 * bp * (d_in * h1 + h1 * h2 + h2 * d_out)
    bytes_accessed = bp * d_in * 2 + param_bytes + bp * d_out * 2

    tile_x = pl.BlockSpec((tm, d_in), lambda i: (i, 0))
    tile_o = pl.BlockSpec((tm, d_out), lambda i: (i, 0))
    if single_buffer_params:
        # Constant index_map -> DMA'd once; one buffer is enough.
        resident = lambda a: pl.BlockSpec(a.shape, lambda i: (0, 0),
                                          pipeline_mode=pl.Buffered(1))
    else:
        resident = lambda a: pl.BlockSpec(a.shape, lambda i: (0, 0))

    # TODO(synk): if resident params ever exceed ~40 MiB (v7x) switch to a
    # K-tiled W1 with an accumulator scratch instead of the all-resident path.
    return pl.pallas_call(
        _mlp_kernel,
        out_shape=jax.ShapeDtypeStruct((bp, d_out), jnp.bfloat16),
        grid=grid,
        in_specs=[tile_x,
                  resident(w1), resident(b1),
                  resident(w2), resident(b2),
                  resident(w3), resident(b3)],
        out_specs=tile_o,
        compiler_params=pltpu.CompilerParams(
            dimension_semantics=("parallel",),
            vmem_limit_bytes=vmem_limit),
        cost_estimate=pl.CostEstimate(flops=flops,
                                      transcendentals=0,
                                      bytes_accessed=bytes_accessed),
    )(x, w1, b1, w2, b2, w3, b3)


# --------------------------------------------------------------------------- #
# Parameter init (matches nn.init.orthogonal_(gain=sqrt(2)), zeros_ bias)
# --------------------------------------------------------------------------- #
def orthogonal_init(key, out_features, in_features, gain):
    """Deterministic orthogonal init, torch layout (out_features, in_features)."""
    n = max(out_features, in_features)
    a = jax.random.normal(key, (n, n), dtype=jnp.float32)
    q, r = jnp.linalg.qr(a)
    d = jnp.sign(jnp.diag(r))
    d = jnp.where(d == 0, 1.0, d)  # guard against zero diagonal entries
    q = q * d[None, :]
    return gain * q[:out_features, :in_features]


class MLPPallas:
    """JAX/Pallas re-implementation of the PyTorch MLP module."""

    LANE = 128  # pad feature dims to lane/MXU-friendly multiples

    def __init__(self, input_dim, output_dim, hidden_dims=(256, 256), key=None):
        if isinstance(input_dim, tuple):
            self.flat_input_dim = int(np.prod(input_dim))
            self._flatten = True
        else:
            self.flat_input_dim = int(input_dim)
            self._flatten = False
        self.output_dim = int(output_dim)
        self._single_buffer_ok = None  # resolved on first call

        dims = [self.flat_input_dim] + list(hidden_dims) + [self.output_dim]
        dims_pad = [_round_up(d, self.LANE) for d in dims]
        self.d_in_pad = dims_pad[0]
        self.d_out_pad = dims_pad[-1]

        gain = float(np.sqrt(2.0))
        keys = jax.random.split(key, len(dims) - 1)

        self.ref_params = []      # unpadded f32 (in, out) weights for reference
        self.kernel_params = []   # padded bf16 weights, padded f32 biases
        for i in range(len(dims) - 1):
            d_in, d_out = dims[i], dims[i + 1]
            d_in_p, d_out_p = dims_pad[i], dims_pad[i + 1]
            w_torch = orthogonal_init(keys[i], d_out, d_in, gain)   # (out, in)
            w = jnp.asarray(w_torch).T                              # (in, out)
            b = jnp.zeros((1, d_out), dtype=jnp.float32)
            self.ref_params.append((w, b))

            w_pad = jnp.zeros((d_in_p, d_out_p), dtype=jnp.float32)
            w_pad = w_pad.at[:d_in, :d_out].set(w)
            b_pad = jnp.zeros((1, d_out_p), dtype=jnp.float32)
            b_pad = b_pad.at[:, :d_out].set(b)
            self.kernel_params.append((w_pad.astype(jnp.bfloat16), b_pad))

    @staticmethod
    def _pick_tm(batch):
        """Returns (tm, padded_batch) with padded_batch % tm == 0."""
        cap = _tm_cap()
        b8 = _round_up(batch, 8)
        if b8 <= 2 * cap:
            # Aim for 2 grid steps once the batch is big enough so v7x's two
            # TensorCores both get work (neutral on single-TC v5e/v6e).
            tm = b8 if b8 < 16 else _round_up(pl.cdiv(b8, 2), 8)
        else:
            tm = cap
        return tm, _round_up(b8, tm)

    def _run(self, x_pad, tm):
        (w1, b1), (w2, b2), (w3, b3) = self.kernel_params
        args = (x_pad, w1, b1, w2, b2, w3, b3)
        if self._single_buffer_ok is not False:
            try:
                out = mlp_forward(*args, tm=tm, single_buffer_params=True)
                self._single_buffer_ok = True
                return out
            except Exception:
                self._single_buffer_ok = False
        return mlp_forward(*args, tm=tm, single_buffer_params=False)

    def __call__(self, x):
        if self._flatten:
            x = x.reshape(x.shape[0], -1)      # x.view(x.size(0), -1)
        b = x.shape[0]
        tm, b_pad = self._pick_tm(b)

        # Single cast to bf16; pad only if the shapes actually need it.
        x = x.astype(jnp.bfloat16)
        pad_r = b_pad - b
        pad_c = self.d_in_pad - self.flat_input_dim
        if pad_r or pad_c:
            x = jnp.pad(x, ((0, pad_r), (0, pad_c)))

        out = self._run(x, tm)                  # (b_pad, d_out_pad) bf16
        # Slice the real rows/cols first, then upcast -> only 1/32 of the
        # padded f32 bytes ever leave as f32.
        return out[:b, :self.output_dim].astype(jnp.float32)


# --------------------------------------------------------------------------- #
# Self-test
# --------------------------------------------------------------------------- #
if __name__ == "__main__":
    key = jax.random.PRNGKey(0)
    k_init, k_x = jax.random.split(key)

    # Tuple input_dim (4, 16, 16) -> flattened 1024, two hidden layers of 32
    # (padded to 128 inside the wrapper), output dim 8 (padded to 128), batch 2.
    input_dim = (4, 16, 16)
    output_dim = 8
    hidden_dims = (32, 32)

    model = MLPPallas(input_dim, output_dim, hidden_dims, key=k_init)

    x = jax.random.normal(k_x, (2,) + input_dim, dtype=jnp.float32)
    out = model(x)
    out = jax.block_until_ready(out)
    assert out.shape == (2, output_dim)

    # Reference 1: plain-JAX with the kernel's dtype flow (bf16 operands,
    # f32 accumulation, bf16 output store).
    xr = x.reshape(x.shape[0], -1)
    ref = xr.astype(jnp.bfloat16)
    for i, (w, bb) in enumerate(model.ref_params):
        ref = jnp.dot(ref, w.astype(jnp.bfloat16),
                      preferred_element_type=jnp.float32) + bb
        if i < len(model.ref_params) - 1:
            ref = jnp.maximum(ref, 0.0).astype(jnp.bfloat16)
    ref = ref.astype(jnp.bfloat16).astype(jnp.float32)
    assert jnp.allclose(out, ref, atol=1e-2, rtol=1e-2)

    # Reference 2: full f32 math (loose tolerance; kernel uses bf16 operands).
    ref_f32 = xr
    for i, (w, bb) in enumerate(model.ref_params):
        ref_f32 = ref_f32 @ w + bb
        if i < len(model.ref_params) - 1:
            ref_f32 = jnp.maximum(ref_f32, 0.0)
    assert jnp.allclose(out, ref_f32, atol=5e-2, rtol=5e-2)

    print("KERNEL_OK")
</pallas_src>

<mosaic_0001>
module attributes {stable_mosaic.version = 11 : i64} {
  func.func @_mlp_kernel(%arg0: i32, %arg1: memref<8x1024xbf16, #tpu.memory_space<vmem>>, %arg2: memref<1024x128xbf16, #tpu.memory_space<vmem>>, %arg3: memref<1x128xf32, #tpu.memory_space<vmem>>, %arg4: memref<128x128xbf16, #tpu.memory_space<vmem>>, %arg5: memref<1x128xf32, #tpu.memory_space<vmem>>, %arg6: memref<128x128xbf16, #tpu.memory_space<vmem>>, %arg7: memref<1x128xf32, #tpu.memory_space<vmem>>, %arg8: memref<8x128xbf16, #tpu.memory_space<vmem>>) attributes {dimension_semantics = [#tpu.dimension_semantics<parallel>], iteration_bounds = array<i64: 1>, scalar_prefetch = 0 : i64, scratch_operands = 0 : i64, tpu.core_type = #tpu.core_type<tc>, window_params = [{transform_indices = @transform_0, window_bounds = array<i64: 8, 1024>}, {pipeline_mode = #tpu.pipeline_mode<synchronous>, transform_indices = @transform_1, window_bounds = array<i64: 1024, 128>}, {pipeline_mode = #tpu.pipeline_mode<synchronous>, transform_indices = @transform_2, window_bounds = array<i64: 1, 128>}, {pipeline_mode = #tpu.pipeline_mode<synchronous>, transform_indices = @transform_3, window_bounds = array<i64: 128, 128>}, {pipeline_mode = #tpu.pipeline_mode<synchronous>, transform_indices = @transform_4, window_bounds = array<i64: 1, 128>}, {pipeline_mode = #tpu.pipeline_mode<synchronous>, transform_indices = @transform_5, window_bounds = array<i64: 128, 128>}, {pipeline_mode = #tpu.pipeline_mode<synchronous>, transform_indices = @transform_6, window_bounds = array<i64: 1, 128>}, {transform_indices = @transform_7, window_bounds = array<i64: 8, 128>}]} {
    %c0 = arith.constant 0 : index
    %c0_0 = arith.constant 0 : index
    %0 = vector.load %arg1[%c0, %c0_0] : memref<8x1024xbf16, #tpu.memory_space<vmem>>, vector<8x1024xbf16>
    %c0_1 = arith.constant 0 : index
    %c0_2 = arith.constant 0 : index
    %1 = vector.load %arg2[%c0_1, %c0_2] : memref<1024x128xbf16, #tpu.memory_space<vmem>>, vector<1024x128xbf16>
    %cst = arith.constant dense<0.000000e+00> : vector<8x128xf32>
    %2 = tpu.matmul %0, %1, %cst {dimension_numbers = #tpu.dot_dimension_numbers<[1], [0], [0], [1], [0, 0, 1, 1], [], []>} : vector<8x1024xbf16>, vector<1024x128xbf16>, vector<8x128xf32> -> vector<8x128xf32>
    %c0_3 = arith.constant 0 : index
    %c0_4 = arith.constant 0 : index
    %3 = vector.load %arg3[%c0_3, %c0_4] : memref<1x128xf32, #tpu.memory_space<vmem>>, vector<1x128xf32>
    %4 = vector.broadcast %3 : vector<1x128xf32> to vector<8x128xf32>
    %5 = arith.addf %2, %4 : vector<8x128xf32>
    %cst_5 = arith.constant 0.000000e+00 : f32
    %6 = vector.broadcast %cst_5 : f32 to vector<8x128xf32>
    %7 = arith.maximumf %5, %6 : vector<8x128xf32>
    %8 = arith.truncf %7 : vector<8x128xf32> to vector<8x128xbf16>
    %c0_6 = arith.constant 0 : index
    %c0_7 = arith.constant 0 : index
    %9 = vector.load %arg4[%c0_6, %c0_7] : memref<128x128xbf16, #tpu.memory_space<vmem>>, vector<128x128xbf16>
    %cst_8 = arith.constant dense<0.000000e+00> : vector<8x128xf32>
    %10 = tpu.matmul %8, %9, %cst_8 {dimension_numbers = #tpu.dot_dimension_numbers<[1], [0], [0], [1], [0, 0, 1, 1], [], []>} : vector<8x128xbf16>, vector<128x128xbf16>, vector<8x128xf32> -> vector<8x128xf32>
    %c0_9 = arith.constant 0 : index
    %c0_10 = arith.constant 0 : index
    %11 = vector.load %arg5[%c0_9, %c0_10] : memref<1x128xf32, #tpu.memory_space<vmem>>, vector<1x128xf32>
    %12 = vector.broadcast %11 : vector<1x128xf32> to vector<8x128xf32>
    %13 = arith.addf %10, %12 : vector<8x128xf32>
    %cst_11 = arith.constant 0.000000e+00 : f32
    %14 = vector.broadcast %cst_11 : f32 to vector<8x128xf32>
    %15 = arith.maximumf %13, %14 : vector<8x128xf32>
    %16 = arith.truncf %15 : vector<8x128xf32> to vector<8x128xbf16>
    %c0_12 = arith.constant 0 : index
    %c0_13 = arith.constant 0 : index
    %17 = vector.load %arg6[%c0_12, %c0_13] : memref<128x128xbf16, #tpu.memory_space<vmem>>, vector<128x128xbf16>
    %cst_14 = arith.constant dense<0.000000e+00> : vector<8x128xf32>
    %18 = tpu.matmul %16, %17, %cst_14 {dimension_numbers = #tpu.dot_dimension_numbers<[1], [0], [0], [1], [0, 0, 1, 1], [], []>} : vector<8x128xbf16>, vector<128x128xbf16>, vector<8x128xf32> -> vector<8x128xf32>
    %c0_15 = arith.constant 0 : index
    %c0_16 = arith.constant 0 : index
    %19 = vector.load %arg7[%c0_15, %c0_16] : memref<1x128xf32, #tpu.memory_space<vmem>>, vector<1x128xf32>
    %20 = vector.broadcast %19 : vector<1x128xf32> to vector<8x128xf32>
    %21 = arith.addf %18, %20 : vector<8x128xf32>
    %22 = arith.truncf %21 : vector<8x128xf32> to vector<8x128xbf16>
    %c0_17 = arith.constant 0 : index
    %c0_18 = arith.constant 0 : index
    %23 = vector.load %arg8[%c0_17, %c0_18] : memref<8x128xbf16, #tpu.memory_space<vmem>>, vector<8x128xbf16>
    tpu.vector_store %arg8[%c0_17, %c0_18], %22 {strides = array<i32>} : memref<8x128xbf16, #tpu.memory_space<vmem>>, vector<8x128xbf16>,
    return
  }
  func.func @transform_0(%arg0: i32) -> (i32, i32) {
    %c0_i32 = arith.constant 0 : i32
    %c0_i32_0 = arith.constant 0 : i32
    return %arg0, %c0_i32 : i32, i32
  }
  func.func @transform_1(%arg0: i32) -> (i32, i32) {
    %c0_i32 = arith.constant 0 : i32
    %c0_i32_0 = arith.constant 0 : i32
    %c0_i32_1 = arith.constant 0 : i32
    return %c0_i32, %c0_i32_0 : i32, i32
  }
  func.func @transform_2(%arg0: i32) -> (i32, i32) {
    %c0_i32 = arith.constant 0 : i32
    %c0_i32_0 = arith.constant 0 : i32
    %c0_i32_1 = arith.constant 0 : i32
    return %c0_i32, %c0_i32_0 : i32, i32
  }
  func.func @transform_3(%arg0: i32) -> (i32, i32) {
    %c0_i32 = arith.constant 0 : i32
    %c0_i32_0 = arith.constant 0 : i32
    %c0_i32_1 = arith.constant 0 : i32
    return %c0_i32, %c0_i32_0 : i32, i32
  }
  func.func @transform_4(%arg0: i32) -> (i32, i32) {
    %c0_i32 = arith.constant 0 : i32
    %c0_i32_0 = arith.constant 0 : i32
    %c0_i32_1 = arith.constant 0 : i32
    return %c0_i32, %c0_i32_0 : i32, i32
  }
  func.func @transform_5(%arg0: i32) -> (i32, i32) {
    %c0_i32 = arith.constant 0 : i32
    %c0_i32_0 = arith.constant 0 : i32
    %c0_i32_1 = arith.constant 0 : i32
    return %c0_i32, %c0_i32_0 : i32, i32
  }
  func.func @transform_6(%arg0: i32) -> (i32, i32) {
    %c0_i32 = arith.constant 0 : i32
    %c0_i32_0 = arith.constant 0 : i32
    %c0_i32_1 = arith.constant 0 : i32
    return %c0_i32, %c0_i32_0 : i32, i32
  }
  func.func @transform_7(%arg0: i32) -> (i32, i32) {
    %c0_i32 = arith.constant 0 : i32
    %c0_i32_0 = arith.constant 0 : i32
    return %arg0, %c0_i32 : i32, i32
  }
}

module attributes {stable_mosaic.version = 11 : i64} {
  func.func @_mlp_kernel(%arg0: i32, %arg1: memref<8x1024xbf16, #tpu.memory_space<vmem>>, %arg2: memref<1024x128xbf16, #tpu.memory_space<vmem>>, %arg3: memref<1x128xf32, #tpu.memory_space<vmem>>, %arg4: memref<128x128xbf16, #tpu.memory_space<vmem>>, %arg5: memref<1x128xf32, #tpu.memory_space<vmem>>, %arg6: memref<128x128xbf16, #tpu.memory_space<vmem>>, %arg7: memref<1x128xf32, #tpu.memory_space<vmem>>, %arg8: memref<8x128xbf16, #tpu.memory_space<vmem>>) attributes {dimension_semantics = [#tpu.dimension_semantics<parallel>], iteration_bounds = array<i64: 1>, scalar_prefetch = 0 : i64, scratch_operands = 0 : i64, tpu.core_type = #tpu.core_type<tc>, window_params = [{transform_indices = @transform_0, window_bounds = array<i64: 8, 1024>}, {pipeline_mode = #tpu.pipeline_mode<synchronous>, transform_indices = @transform_1, window_bounds = array<i64: 1024, 128>}, {pipeline_mode = #tpu.pipeline_mode<synchronous>, transform_indices = @transform_2, window_bounds = array<i64: 1, 128>}, {pipeline_mode = #tpu.pipeline_mode<synchronous>, transform_indices = @transform_3, window_bounds = array<i64: 128, 128>}, {pipeline_mode = #tpu.pipeline_mode<synchronous>, transform_indices = @transform_4, window_bounds = array<i64: 1, 128>}, {pipeline_mode = #tpu.pipeline_mode<synchronous>, transform_indices = @transform_5, window_bounds = array<i64: 128, 128>}, {pipeline_mode = #tpu.pipeline_mode<synchronous>, transform_indices = @transform_6, window_bounds = array<i64: 1, 128>}, {transform_indices = @transform_7, window_bounds = array<i64: 8, 128>}]} {
    %c0 = arith.constant 0 : index
    %c0_0 = arith.constant 0 : index
    %0 = vector.load %arg1[%c0, %c0_0] : memref<8x1024xbf16, #tpu.memory_space<vmem>>, vector<8x1024xbf16>
    %c0_1 = arith.constant 0 : index
    %c0_2 = arith.constant 0 : index
    %1 = vector.load %arg2[%c0_1, %c0_2] : memref<1024x128xbf16, #tpu.memory_space<vmem>>, vector<1024x128xbf16>
    %cst = arith.constant dense<0.000000e+00> : vector<8x128xf32>
    %2 = tpu.matmul %0, %1, %cst {dimension_numbers = #tpu.dot_dimension_numbers<[1], [0], [0], [1], [0, 0, 1, 1], [], []>} : vector<8x1024xbf16>, vector<1024x128xbf16>, vector<8x128xf32> -> vector<8x128xf32>
    %c0_3 = arith.constant 0 : index
    %c0_4 = arith.constant 0 : index
    %3 = vector.load %arg3[%c0_3, %c0_4] : memref<1x128xf32, #tpu.memory_space<vmem>>, vector<1x128xf32>
    %4 = vector.broadcast %3 : vector<1x128xf32> to vector<8x128xf32>
    %5 = arith.addf %2, %4 : vector<8x128xf32>
    %cst_5 = arith.constant 0.000000e+00 : f32
    %6 = vector.broadcast %cst_5 : f32 to vector<8x128xf32>
    %7 = arith.maximumf %5, %6 : vector<8x128xf32>
    %8 = arith.truncf %7 : vector<8x128xf32> to vector<8x128xbf16>
    %c0_6 = arith.constant 0 : index
    %c0_7 = arith.constant 0 : index
    %9 = vector.load %arg4[%c0_6, %c0_7] : memref<128x128xbf16, #tpu.memory_space<vmem>>, vector<128x128xbf16>
    %cst_8 = arith.constant dense<0.000000e+00> : vector<8x128xf32>
    %10 = tpu.matmul %8, %9, %cst_8 {dimension_numbers = #tpu.dot_dimension_numbers<[1], [0], [0], [1], [0, 0, 1, 1], [], []>} : vector<8x128xbf16>, vector<128x128xbf16>, vector<8x128xf32> -> vector<8x128xf32>
    %c0_9 = arith.constant 0 : index
    %c0_10 = arith.constant 0 : index
    %11 = vector.load %arg5[%c0_9, %c0_10] : memref<1x128xf32, #tpu.memory_space<vmem>>, vector<1x128xf32>
    %12 = vector.broadcast %11 : vector<1x128xf32> to vector<8x128xf32>
    %13 = arith.addf %10, %12 : vector<8x128xf32>
    %cst_11 = arith.constant 0.000000e+00 : f32
    %14 = vector.broadcast %cst_11 : f32 to vector<8x128xf32>
    %15 = arith.maximumf %13, %14 : vector<8x128xf32>
    %16 = arith.truncf %15 : vector<8x128xf32> to vector<8x128xbf16>
    %c0_12 = arith.constant 0 : index
    %c0_13 = arith.constant 0 : index
    %17 = vector.load %arg6[%c0_12, %c0_13] : memref<128x128xbf16, #tpu.memory_space<vmem>>, vector<128x128xbf16>
    %cst_14 = arith.constant dense<0.000000e+00> : vector<8x128xf32>
    %18 = tpu.matmul %16, %17, %cst_14 {dimension_numbers = #tpu.dot_dimension_numbers<[1], [0], [0], [1], [0, 0, 1, 1], [], []>} : vector<8x128xbf16>, vector<128x128xbf16>, vector<8x128xf32> -> vector<8x128xf32>
    %c0_15 = arith.constant 0 : index
    %c0_16 = arith.constant 0 : index
    %19 = vector.load %arg7[%c0_15, %c0_16] : memref<1x128xf32, #tpu.memory_space<vmem>>, vector<1x128xf32>
    %20 = vector.broadcast %19 : vector<1x128xf32> to vector<8x128xf32>
    %21 = arith.addf %18, %20 : vector<8x128xf32>
    %22 = arith.truncf %21 : vector<8x128xf32> to vector<8x128xbf16>
    %c0_17 = arith.constant 0 : index
    %c0_18 = arith.constant 0 : index
    %23 = vector.load %arg8[%c0_17, %c0_18] : memref<8x128xbf16, #tpu.memory_space<vmem>>, vector<8x128xbf16>
    tpu.vector_store %arg8[%c0_17, %c0_18], %22 {strides = array<i32>} : memref<8x128xbf16, #tpu.memory_space<vmem>>, vector<8x128xbf16>,
    return
  }
  func.func @transform_0(%arg0: i32) -> (i32, i32) {
    %c0_i32 = arith.constant 0 : i32
    %c0_i32_0 = arith.constant 0 : i32
    return %arg0, %c0_i32 : i32, i32
  }
  func.func @transform_1(%arg0: i32) -> (i32, i32) {
    %c0_i32 = arith.constant 0 : i32
    %c0_i32_0 = arith.constant 0 : i32
    %c0_i32_1 = arith.constant 0 : i32
    return %c0_i32, %c0_i32_0 : i32, i32
  }
  func.func @transform_2(%arg0: i32) -> (i32, i32) {
    %c0_i32 = arith.constant 0 : i32
    %c0_i32_0 = arith.constant 0 : i32
    %c0_i32_1 = arith.constant 0 : i32
    return %c0_i32, %c0_i32_0 : i32, i32
  }
  func.func @transform_3(%arg0: i32) -> (i32, i32) {
    %c0_i32 = arith.constant 0 : i32
    %c0_i32_0 = arith.constant 0 : i32
    %c0_i32_1 = arith.constant 0 : i32
    return %c0_i32, %c0_i32_0 : i32, i32
  }
  func.func @transform_4(%arg0: i32) -> (i32, i32) {
    %c0_i32 = arith.constant 0 : i32
    %c0_i32_0 = arith.constant 0 : i32
    %c0_i32_1 = arith.constant 0 : i32
    return %c0_i32, %c0_i32_0 : i32, i32
  }
  func.func @transform_5(%arg0: i32) -> (i32, i32) {
    %c0_i32 = arith.constant 0 : i32
    %c0_i32_0 = arith.constant 0 : i32
    %c0_i32_1 = arith.constant 0 : i32
    return %c0_i32, %c0_i32_0 : i32, i32
  }
  func.func @transform_6(%arg0: i32) -> (i32, i32) {
    %c0_i32 = arith.constant 0 : i32
    %c0_i32_0 = arith.constant 0 : i32
    %c0_i32_1 = arith.constant 0 : i32
    return %c0_i32, %c0_i32_0 : i32, i32
  }
  func.func @transform_7(%arg0: i32) -> (i32, i32) {
    %c0_i32 = arith.constant 0 : i32
    %c0_i32_0 = arith.constant 0 : i32
    return %arg0, %c0_i32 : i32, i32
  }
}

</mosaic_0001>

<bundles_post_ra>
// kernel: mlp_forward.1
= control target key start
LH: loop header
LB: loop body
LE: loop exit
PB: predicated region body
PF: predicated region fallthrough
CT: control target
= control target key end

     0   :  { %12 = vsyncpa [#allocation3], 0  ;;  %s1634_s0 = inlined_call_operand.hbm [shape: bf16[8,1024], index: 0, kind: input, shape index: {}]   ;;  %s1635_s1 = inlined_call_operand.hbm [shape: bf16[1024,128], index: 1, kind: input, shape index: {}]   ;;  %s1636_s2 = inlined_call_operand.vmem [shape: f32[1,128], index: 2, kind: input, shape index: {}]   ;;  %s1637_s3 = inlined_call_operand.hbm [shape: bf16[128,128], index: 3, kind: input, shape index: {}]   ;;  %s1638_s4 = inlined_call_operand.vmem [shape: f32[1,128], index: 4, kind: input, shape index: {}]   ;;  %s1639_s5 = inlined_call_operand.hbm [shape: bf16[128,128], index: 5, kind: input, shape index: {}]   ;;  %s1640_s6 = inlined_call_operand.vmem [shape: f32[1,128], index: 6, kind: input, shape index: {}]   ;;  %s1641_s7 = inlined_call_operand.hbm [shape: bf16[8,128], index: 7, kind: output, shape index: {}]  }
   0x1   :  { %13 = vsyncpa [#allocation6], 0 }
   0x2   :  { %14 = vsyncpa [#allocation9], 0 }
   0x3   :  { %15 = vsyncpa [#allocation4], 0  ;;  %s1489_s24 = smov [#allocation5]   ;;  %s1371_s28 = scalar_lea.hbm %s1635_s1, 8192 }
   0x4   :  { %s31_s25 = sshll.u32 %s1489_s24, 4  ;;  %p1372_p0 = scmp.ne.s32.totalorder %s1635_s1, %s1371_s28  ;;  %s32_s25 = int_to_ptr.vmem [resolvable:$true] %s31_s25 }
   0x5   :  { %p1375_p1 = scmp.lt.u32.totalorder %s1371_s28, %s1635_s1 }
   0x7   :  { %p1377_p2 = pnand %p1375_p1, %p1372_p0 }
   0x9   :  { %1380 = shalt.err (!%p1377_p2)
}
   0xa   :  { %s1381_s10 = scalar_lea.vmem %s32_s25, 8192  ;;  %p1386_p4 = scmp.lt.s32.totalorder %s32_s25, %s32_s25 }
   0xb   :  { %p1382_p3 = scmp.ne.s32.totalorder %s32_s25, %s1381_s10  ;;  %p1387_p5 = scmp.lt.s32.totalorder %s1381_s10, %s1381_s10 }
   0xd   :  { %p1388_p6 = por %p1387_p5, %p1386_p4 }
   0xf   :  { %p1389_p7 = pnand %p1388_p6, %p1382_p3 }
  0x11   :  { %1392 = shalt.err (!%p1389_p7)
}
  0x12   :  { %s1490_s11 = smov 64   ;;  %s1491_s12 = smov 4  }
  0x13   :  { %37 = dma.hbm_to_vmem [thread:$0]  %s1635_s1, 8192, %s32_s25, [#allocation6], %s1490_s11, %s1490_s11, %s1491_s12  }
  0x14   :  { %s1492_s15 = smov [#allocation2]   ;;  %s1493_s17 = smov [#allocation7]  }
  0x15   :  { %s22_s16 = sshll.u32 %s1492_s15, 4  ;;  %s45_s18 = sshll.u32 %s1493_s17, 4  ;;  %s23_s16 = int_to_ptr.vmem [resolvable:$true] %s22_s16  ;;  %s46_s18 = int_to_ptr.vmem [resolvable:$true] %s45_s18 }
  0x16   :  { %s1393_s21 = scalar_lea.hbm %s1634_s0, 512 }
  0x17   :  { %p1394_p8 = scmp.ne.s32.totalorder %s1634_s0, %s1393_s21  ;;  %p1397_p9 = scmp.lt.u32.totalorder %s1393_s21, %s1634_s0 }
  0x19   :  { %p1399_p10 = pnand %p1397_p9, %p1394_p8 }
  0x1b   :  { %1402 = shalt.err (!%p1399_p10)
}
  0x1c   :  { %s1403_s1 = scalar_lea.vmem %s23_s16, 512  ;;  %p1408_p12 = scmp.lt.s32.totalorder %s23_s16, %s23_s16 }
  0x1d   :  { %p1404_p11 = scmp.ne.s32.totalorder %s23_s16, %s1403_s1  ;;  %p1409_p13 = scmp.lt.s32.totalorder %s1403_s1, %s1403_s1 }
  0x1f   :  { %p1410_p0 = por %p1409_p13, %p1408_p12 }
  0x21   :  { %p1411_p1 = pnand %p1410_p0, %p1404_p11 }
  0x23   :  { %1414 = shalt.err (!%p1411_p1)
}
  0x24   :  { %25 = dma.hbm_to_vmem [thread:$0]  %s1634_s0, 512, %s23_s16, [#allocation3]  }
  0x25   :  { %s1415_s30 = scalar_lea.hbm %s1637_s3, 1024 }
  0x26   :  { %p1416_p2 = scmp.ne.s32.totalorder %s1637_s3, %s1415_s30  ;;  %p1419_p3 = scmp.lt.u32.totalorder %s1415_s30, %s1637_s3 }
  0x28   :  { %p1421_p4 = pnand %p1419_p3, %p1416_p2 }
  0x2a   :  { %1424 = shalt.err (!%p1421_p4)
}
  0x2b   :  { %s1425_s14 = scalar_lea.vmem %s46_s18, 1024  ;;  %p1430_p6 = scmp.lt.s32.totalorder %s46_s18, %s46_s18 }
  0x2c   :  { %p1426_p5 = scmp.ne.s32.totalorder %s46_s18, %s1425_s14  ;;  %p1431_p7 = scmp.lt.s32.totalorder %s1425_s14, %s1425_s14 }
  0x2e   :  { %p1432_p8 = por %p1431_p7, %p1430_p6 }
  0x30   :  { %p1433_p9 = pnand %p1432_p8, %p1426_p5 }
  0x32   :  { %1436 = shalt.err (!%p1433_p9)
}
  0x33   :  { %51 = dma.hbm_to_vmem [thread:$0]  %s1637_s3, 1024, %s46_s18, [#allocation6], %s1490_s11, %s1490_s11, %s1491_s12  }
  0x34   :  { %s1494_s16 = smov [#allocation8]   ;;  %s1437_s21 = scalar_lea.hbm %s1639_s5, 1024 }
  0x35   :  { %s59_s17 = sshll.u32 %s1494_s16, 4  ;;  %p1438_p10 = scmp.ne.s32.totalorder %s1639_s5, %s1437_s21  ;;  %s60_s17 = int_to_ptr.vmem [resolvable:$true] %s59_s17 }
  0x36   :  { %p1441_p11 = scmp.lt.u32.totalorder %s1437_s21, %s1639_s5 }
  0x38   :  { %p1443_p12 = pnand %p1441_p11, %p1438_p10 }
  0x3a   :  { %1446 = shalt.err (!%p1443_p12)
}
  0x3b   :  { %s1447_s1 = scalar_lea.vmem %s60_s17, 1024  ;;  %p1452_p0 = scmp.lt.s32.totalorder %s60_s17, %s60_s17 }
  0x3c   :  { %p1448_p13 = scmp.ne.s32.totalorder %s60_s17, %s1447_s1  ;;  %p1453_p1 = scmp.lt.s32.totalorder %s1447_s1, %s1447_s1 }
  0x3e   :  { %p1454_p2 = por %p1453_p1, %p1452_p0 }
  0x40   :  { %p1455_p3 = pnand %p1454_p2, %p1448_p13 }
  0x42   :  { %1458 = shalt.err (!%p1455_p3)
}
  0x43   :  { %65 = dma.hbm_to_vmem [thread:$0]  %s1639_s5, 1024, %s60_s17, [#allocation9], %s1490_s11, %s1490_s11, %s1491_s12  }
  0x44   :  { %1481 = dma.done.wait [#allocation3], 512  }
  0x45   :  { %1482 = vsyncadd [#allocation3], 4294966784 }
  0x46   :  { %1483 = dma.done.wait [#allocation6], 9216  }
  0x47   :  { %1484 = vsyncadd [#allocation6], 4294958080 }
  0x48   :  { %1485 = dma.done.wait [#allocation9], 1024  }
  0x49   :  { %1486 = vsyncadd [#allocation9], 4294966272  ;;  %v1283_v0 = vld [vmem:[#allocation5 + $0x40] sm:$0xff]   ;;  %v1287_v4 = vld [vmem:[#allocation5 + $0x48] sm:$0xff]   ;;  %vm1496_vm0 = vmmov 0   ;;  %s1497_s28 = smov [#allocation10]  }
  0x4a   :  { %v1284_v1 = vld [vmem:[#allocation5 + $0xc0] sm:$0xff]   ;;  %1128 = vmatprep.subr.bf16.mxu0 %v1283_v0  ;;  %v1288_v5 = vld [vmem:[#allocation5 + $0xc8] sm:$0xff]   ;;  %v1291_v8 = vld [vmem:[#allocation5 + $0x50] sm:$0xff]   ;;  %s1026_s29 = sshll.u32 %s1497_s28, 4  ;;  %s1027_s29 = int_to_ptr.vmem [resolvable:$true] %s1026_s29 }
  0x4b   :  { %v1285_v2 = vld [vmem:[#allocation5] sm:$0xff]   ;;  %1150 = vmatprep.subr.bf16.mxu1 %v1284_v1  ;;  %v1289_v6 = vld [vmem:[#allocation5 + $0x8] sm:$0xff]   ;;  %v1292_v9 = vld [vmem:[#allocation5 + $0xd0] sm:$0xff]   ;;  %p1464_p5 = scmp.lt.s32.totalorder %s1027_s29, %s1027_s29 }
  0x4c   :  { %v1286_v3 = vld [vmem:[#allocation5 + $0x80] sm:$0xff]   ;;  %1129 = vmatpush3.bf16.msra.mxu0 %v1285_v2  ;;  %v1290_v7 = vld [vmem:[#allocation5 + $0x88] sm:$0xff]   ;;  %v1293_v10 = vld [vmem:[#allocation5 + $0x10] sm:$0xff]  }
  0x4d   :  { %1151 = vmatpush3.bf16.msra.mxu1 %v1286_v3  ;;  %1130 = vmatprep.subr.bf16.mxu0 %v1287_v4  ;;  %v1294_v11 = vld [vmem:[#allocation5 + $0x90] sm:$0xff]   ;;  %v1295_v12 = vld [vmem:[#allocation5 + $0x58] sm:$0xff]   ;;  %v1299_v16 = vld [vmem:[#allocation5 + $0x60] sm:$0xff]  }
  0x4e   :  { %1152 = vmatprep.subr.bf16.mxu1 %v1288_v5  ;;  %v1296_v13 = vld [vmem:[#allocation5 + $0xd8] sm:$0xff]   ;;  %v1300_v17 = vld [vmem:[#allocation5 + $0xe0] sm:$0xff]   ;;  %v1303_v20 = vld [vmem:[#allocation5 + $0x68] sm:$0xff]  }
  0x4f   :  { %v1297_v14 = vld [vmem:[#allocation5 + $0x18] sm:$0xff]   ;;  %v1301_v18 = vld [vmem:[#allocation5 + $0x20] sm:$0xff]   ;;  %v1304_v21 = vld [vmem:[#allocation5 + $0xe8] sm:$0xff]  }
  0x50   :  { %1131 = vmatpush3.bf16.msra.mxu0 %v1289_v6  ;;  %v1298_v15 = vld [vmem:[#allocation5 + $0x98] sm:$0xff]   ;;  %v1302_v19 = vld [vmem:[#allocation5 + $0xa0] sm:$0xff]   ;;  %v1305_v22 = vld [vmem:[#allocation5 + $0x28] sm:$0xff]  }
  0x51   :  { %1153 = vmatpush3.bf16.msra.mxu1 %v1290_v7  ;;  %1132 = vmatprep.subr.bf16.mxu0 %v1291_v8  ;;  %v1306_v23 = vld [vmem:[#allocation5 + $0xa8] sm:$0xff]   ;;  %v1307_v24 = vld [vmem:[#allocation5 + $0x70] sm:$0xff]   ;;  %v1311_v28 = vld [vmem:[#allocation5 + $0x78] sm:$0xff]  }
  0x52   :  { %1154 = vmatprep.subr.bf16.mxu1 %v1292_v9  ;;  %v1308_v25 = vld [vmem:[#allocation5 + $0xf0] sm:$0xff]   ;;  %v1312_v29 = vld [vmem:[#allocation5 + $0xf8] sm:$0xff]   ;;  %v81_v32 = vld [vmem:[#allocation2] sm:$0xff] }
  0x53   :  { %v1309_v26 = vld [vmem:[#allocation5 + $0x30] sm:$0xff]   ;;  %v1313_v30 = vld [vmem:[#allocation5 + $0x38] sm:$0xff]   ;;  %v82_v33 = vld [vmem:[#allocation2 + $0x8] sm:$0xff]  ;;  %v1038_v34 = vcombine.low %v81_v32, %v81_v32  ;;  %v1039_v35 = vcombine.high %v81_v32, %v81_v32 }
  0x54   :  { %1133 = vmatpush3.bf16.msra.mxu0 %v1293_v10  ;;  %v1310_v27 = vld [vmem:[#allocation5 + $0xb0] sm:$0xff]   ;;  %v1314_v31 = vld [vmem:[#allocation5 + $0xb8] sm:$0xff]   ;;  %v1040_v36 = vcombine.low %v82_v33, %v82_v33  ;;  %v1041_v37 = vcombine.high %v82_v33, %v82_v33  ;;  %v1319_v38 = vld [vmem:[#allocation5 + $0x140] sm:$0xff]  }
  0x55   :  { %1155 = vmatpush3.bf16.msra.mxu1 %v1294_v11  ;;  %1134 = vmatprep.subr.bf16.mxu0 %v1295_v12  ;;  %v1320_v39 = vld [vmem:[#allocation5 + $0x1c0] sm:$0xff]   ;;  %v1323_v42 = vld [vmem:[#allocation5 + $0x148] sm:$0xff]   ;;  %v1327_v46 = vld [vmem:[#allocation5 + $0x150] sm:$0xff]  }
  0x56   :  { %1156 = vmatprep.subr.bf16.mxu1 %v1296_v13  ;;  %664 = vmatprep.mubr.bf16.mxu0 %v1039_v35  ;;  %v1321_v40 = vld [vmem:[#allocation5 + $0x100] sm:$0xff]   ;;  %v1324_v43 = vld [vmem:[#allocation5 + $0x1c8] sm:$0xff]   ;;  %v1328_v47 = vld [vmem:[#allocation5 + $0x1d0] sm:$0xff]   ;;  %v1495_v13 = vmov 0.0  }
  0x57   :  { %704 = vmatprep.mubr.bf16.mxu1 %v1041_v37  ;;  %v1322_v41 = vld [vmem:[#allocation5 + $0x180] sm:$0xff]   ;;  %v1325_v44 = vld [vmem:[#allocation5 + $0x108] sm:$0xff]   ;;  %v1329_v48 = vld [vmem:[#allocation5 + $0x110] sm:$0xff]  }
  0x58   :  { %1135 = vmatpush3.bf16.msra.mxu0 %v1297_v14  ;;  %v1326_v45 = vld [vmem:[#allocation5 + $0x188] sm:$0xff]   ;;  %v1330_v49 = vld [vmem:[#allocation5 + $0x190] sm:$0xff]   ;;  %v1331_v50 = vld [vmem:[#allocation5 + $0x158] sm:$0xff]  }
  0x59   :  { %1157 = vmatpush3.bf16.msra.mxu1 %v1298_v15  ;;  %1136 = vmatprep.subr.bf16.mxu0 %v1299_v16  ;;  %v1332_v51 = vld [vmem:[#allocation5 + $0x1d8] sm:$0xff]   ;;  %v1335_v54 = vld [vmem:[#allocation5 + $0x160] sm:$0xff]   ;;  %v1339_v58 = vld [vmem:[#allocation5 + $0x168] sm:$0xff]  }
  0x5a   :  { %1158 = vmatprep.subr.bf16.mxu1 %v1300_v17  ;;  %v1333_v52 = vld [vmem:[#allocation5 + $0x118] sm:$0xff]   ;;  %v1336_v55 = vld [vmem:[#allocation5 + $0x1e0] sm:$0xff]   ;;  %v1340_v59 = vld [vmem:[#allocation5 + $0x1e8] sm:$0xff]  }
  0x5b   :  { %v1334_v53 = vld [vmem:[#allocation5 + $0x198] sm:$0xff]   ;;  %v1337_v56 = vld [vmem:[#allocation5 + $0x120] sm:$0xff]   ;;  %v1341_v60 = vld [vmem:[#allocation5 + $0x128] sm:$0xff]  }
  0x5c   :  { %1137 = vmatpush3.bf16.msra.mxu0 %v1301_v18  ;;  %v1338_v57 = vld [vmem:[#allocation5 + $0x1a0] sm:$0xff]   ;;  %v1342_v61 = vld [vmem:[#allocation5 + $0x1a8] sm:$0xff]   ;;  %v1343_v62 = vld [vmem:[#allocation5 + $0x170] sm:$0xff]  }
  0x5d   :  { %1159 = vmatpush3.bf16.msra.mxu1 %v1302_v19  ;;  %1138 = vmatprep.subr.bf16.mxu0 %v1303_v20  ;;  %v1344_v63 = vld [vmem:[#allocation5 + $0x1f0] sm:$0xff]   ;;  %v1347_v2 = vld [vmem:[#allocation5 + $0x178] sm:$0xff]   ;;  %v1355_v12 = vld [vmem:[#allocation7] sm:$0xff]  }
  0x5e   :  { %1160 = vmatprep.subr.bf16.mxu1 %v1304_v21  ;;  %v1345_v0 = vld [vmem:[#allocation5 + $0x130] sm:$0xff]   ;;  %v1348_v3 = vld [vmem:[#allocation5 + $0x1f8] sm:$0xff]   ;;  %v1356_v14 = vld [vmem:[#allocation7 + $0x8] sm:$0xff]  }
  0x5f   :  { %v1346_v1 = vld [vmem:[#allocation5 + $0x1b0] sm:$0xff]   ;;  %v1349_v4 = vld [vmem:[#allocation5 + $0x138] sm:$0xff]   ;;  %v1359_v17 = vld [vmem:[#allocation7 + $0x20] sm:$0xff]  }
  0x60   :  { %1139 = vmatpush3.bf16.msra.mxu0 %v1305_v22  ;;  %v1350_v5 = vld [vmem:[#allocation5 + $0x1b8] sm:$0xff]   ;;  %v83_v6 = vld [vmem:[#allocation2 + $0x10] sm:$0xff]  ;;  %v1360_v18 = vld [vmem:[#allocation7 + $0x28] sm:$0xff]  }
  0x61   :  { %1161 = vmatpush3.bf16.msra.mxu1 %v1306_v23  ;;  %1140 = vmatprep.subr.bf16.mxu0 %v1307_v24  ;;  %v1042_v7 = vcombine.low %v83_v6, %v83_v6  ;;  %v1043_v8 = vcombine.high %v83_v6, %v83_v6  ;;  %v84_v9 = vld [vmem:[#allocation2 + $0x18] sm:$0xff]  ;;  %v1357_v15 = vld [vmem:[#allocation7 + $0x10] sm:$0xff]   ;;  %v1363_v21 = vld [vmem:[#allocation8] sm:$0xff]  }
  0x62   :  { %1162 = vmatprep.subr.bf16.mxu1 %v1308_v25  ;;  %v1044_v10 = vcombine.low %v84_v9, %v84_v9  ;;  %v1045_v11 = vcombine.high %v84_v9, %v84_v9  ;;  %v1358_v16 = vld [vmem:[#allocation7 + $0x18] sm:$0xff]   ;;  %v1361_v19 = vld [vmem:[#allocation7 + $0x30] sm:$0xff]   ;;  %v1364_v22 = vld [vmem:[#allocation8 + $0x8] sm:$0xff]  }
  0x63   :  { %v1362_v20 = vld [vmem:[#allocation7 + $0x38] sm:$0xff]   ;;  %v1365_v23 = vld [vmem:[#allocation8 + $0x10] sm:$0xff]   ;;  %v1367_v25 = vld [vmem:[#allocation8 + $0x20] sm:$0xff]  }
  0x64   :  { %1141 = vmatpush3.bf16.msra.mxu0 %v1309_v26  ;;  %v1366_v24 = vld [vmem:[#allocation8 + $0x18] sm:$0xff]   ;;  %v1368_v26 = vld [vmem:[#allocation8 + $0x28] sm:$0xff]  }
  0x65   :  { %1163 = vmatpush3.bf16.msra.mxu1 %v1310_v27  ;;  %1142 = vmatprep.subr.bf16.mxu0 %v1311_v28 }
  0x66   :  { %1164 = vmatprep.subr.bf16.mxu1 %v1312_v29  ;;  %v1037_v29 = vld [vmem:[%s1636_s2] ss:$0 sm:$0xff] }
  0x68   :  { %1143 = vmatpush3.bf16.msra.mxu0 %v1313_v30 }
  0x69   :  { %1165 = vmatpush3.bf16.msra.mxu1 %v1314_v31  ;;  %1172 = vmatprep.subr.bf16.mxu0 %v1319_v38 }
  0x6a   :  { %1194 = vmatprep.subr.bf16.mxu1 %v1320_v39 }
  0x6b   :  { %665 = vmatmul.mubr.bf16.vlgmr.msra.gmra.mrb[0].mxu0 %v1038_v34 }
  0x6c   :  { %705 = vmatmul.mubr.bf16.vlgmr.msra.gmra.mrb[0].mxu1 %v1040_v36  ;;  %1173 = vmatpush3.bf16.msra.mxu0 %v1321_v40 }
  0x6d   :  { %1195 = vmatpush3.bf16.msra.mxu1 %v1322_v41  ;;  %1174 = vmatprep.subr.bf16.mxu0 %v1323_v42 }
  0x6e   :  { %1196 = vmatprep.subr.bf16.mxu1 %v1324_v43  ;;  %744 = vmatprep.mubr.bf16.mxu0 %v1043_v8 }
  0x6f   :  { %784 = vmatprep.mubr.bf16.mxu1 %v1045_v11 }
  0x70   :  { %1175 = vmatpush3.bf16.msra.mxu0 %v1325_v44 }
  0x71   :  { %1197 = vmatpush3.bf16.msra.mxu1 %v1326_v45  ;;  %1176 = vmatprep.subr.bf16.mxu0 %v1327_v46 }
  0x72   :  { %1198 = vmatprep.subr.bf16.mxu1 %v1328_v47 }
  0x74   :  { %1177 = vmatpush3.bf16.msra.mxu0 %v1329_v48 }
  0x75   :  { %1199 = vmatpush3.bf16.msra.mxu1 %v1330_v49  ;;  %1178 = vmatprep.subr.bf16.mxu0 %v1331_v50 }
  0x76   :  { %1200 = vmatprep.subr.bf16.mxu1 %v1332_v51 }
  0x78   :  { %1179 = vmatpush3.bf16.msra.mxu0 %v1333_v52 }
  0x79   :  { %1201 = vmatpush3.bf16.msra.mxu1 %v1334_v53  ;;  %1180 = vmatprep.subr.bf16.mxu0 %v1335_v54  ;;  %v1369_v54 = vld [vmem:[#allocation8 + $0x30] sm:$0xff]  }
  0x7a   :  { %1202 = vmatprep.subr.bf16.mxu1 %v1336_v55  ;;  %v1370_v55 = vld [vmem:[#allocation8 + $0x38] sm:$0xff]  }
  0x7c   :  { %1181 = vmatpush3.bf16.msra.mxu0 %v1337_v56  ;;  %v1110_v56 = vld [vmem:[%s1638_s4] ss:$0 sm:$0xff]  ;;  %s1459_s4 = scalar_lea.vmem %s1027_s29, 64 }
  0x7d   :  { %1203 = vmatpush3.bf16.msra.mxu1 %v1338_v57  ;;  %1182 = vmatprep.subr.bf16.mxu0 %v1339_v58  ;;  %p1460_p4 = scmp.ne.s32.totalorder %s1027_s29, %s1459_s4  ;;  %p1465_p6 = scmp.lt.s32.totalorder %s1459_s4, %s1459_s4 }
  0x7e   :  { %1204 = vmatprep.subr.bf16.mxu1 %v1340_v59 }
  0x7f   :  { %p1466_p7 = por %p1465_p6, %p1464_p5 }
  0x80   :  { %1183 = vmatpush3.bf16.msra.mxu0 %v1341_v60 }
  0x81   :  { %1205 = vmatpush3.bf16.msra.mxu1 %v1342_v61  ;;  %1184 = vmatprep.subr.bf16.mxu0 %v1343_v62  ;;  %p1467_p8 = pnand %p1466_p7, %p1460_p4 }
  0x82   :  { %1206 = vmatprep.subr.bf16.mxu1 %v1344_v63 }
  0x84   :  { %1185 = vmatpush3.bf16.msra.mxu0 %v1345_v0  ;;  %v1119_v0 = vld [vmem:[%s1640_s6] ss:$0 sm:$0xff] }
  0x85   :  { %1207 = vmatpush3.bf16.msra.mxu1 %v1346_v1  ;;  %1186 = vmatprep.subr.bf16.mxu0 %v1347_v2 }
  0x86   :  { %1208 = vmatprep.subr.bf16.mxu1 %v1348_v3 }
  0x88   :  { %1187 = vmatpush3.bf16.msra.mxu0 %v1349_v4 }
  0x89   :  { %1209 = vmatpush3.bf16.msra.mxu1 %v1350_v5  ;;  %1234 = vmatprep.subr.bf16.mxu0 %v1495_v13 }
  0x8a   :  { %1254 = vmatprep.subr.bf16.mxu1 %v1495_v13 }
  0x8b   :  { %745 = vmatmul.mubr.bf16.vlgmr.msra.gmra.mrb[4].mxu0 %v1042_v7 }
  0x8c   :  { %785 = vmatmul.mubr.bf16.vlgmr.msra.gmra.mrb[4].mxu1 %v1044_v10  ;;  %1235 = vmatpush3.bf16.msra.mxu0 %v1355_v12 }
  0x8d   :  { %1236 = vmatprep.subr.bf16.mxu0 %v1495_v13  ;;  %1250 = vmatprep.mubr.msk.bf16.mxu0 %vm1496_vm0, %v1495_v13 }
  0x8e   :  { %1270 = vmatprep.mubr.msk.bf16.mxu1 %vm1496_vm0, %v1495_v13  ;;  %1255 = vmatpush3.bf16.msra.mxu1 %v1363_v21 }
  0x8f   :  { %1256 = vmatprep.subr.bf16.mxu1 %v1495_v13 }
  0x90   :  { %1237 = vmatpush3.bf16.msra.mxu0 %v1356_v14 }
  0x91   :  { %1238 = vmatprep.subr.bf16.mxu0 %v1495_v13 }
  0x92   :  { %1257 = vmatpush3.bf16.msra.mxu1 %v1364_v22 }
  0x93   :  { %1258 = vmatprep.subr.bf16.mxu1 %v1495_v13 }
  0x94   :  { %1239 = vmatpush3.bf16.msra.mxu0 %v1357_v15 }
  0x95   :  { %1240 = vmatprep.subr.bf16.mxu0 %v1495_v13 }
  0x96   :  { %1259 = vmatpush3.bf16.msra.mxu1 %v1365_v23 }
  0x97   :  { %1260 = vmatprep.subr.bf16.mxu1 %v1495_v13 }
  0x98   :  { %1241 = vmatpush3.bf16.msra.mxu0 %v1358_v16 }
  0x99   :  { %1242 = vmatprep.subr.bf16.mxu0 %v1495_v13 }
  0x9a   :  { %1261 = vmatpush3.bf16.msra.mxu1 %v1366_v24 }
  0x9b   :  { %1262 = vmatprep.subr.bf16.mxu1 %v1495_v13 }
  0x9c   :  { %1243 = vmatpush3.bf16.msra.mxu0 %v1359_v17 }
  0x9d   :  { %1244 = vmatprep.subr.bf16.mxu0 %v1495_v13 }
  0x9e   :  { %1263 = vmatpush3.bf16.msra.mxu1 %v1367_v25 }
  0x9f   :  { %1264 = vmatprep.subr.bf16.mxu1 %v1495_v13 }
  0xa0   :  { %1245 = vmatpush3.bf16.msra.mxu0 %v1360_v18 }
  0xa1   :  { %1246 = vmatprep.subr.bf16.mxu0 %v1495_v13 }
  0xa2   :  { %1265 = vmatpush3.bf16.msra.mxu1 %v1368_v26 }
  0xa3   :  { %1266 = vmatprep.subr.bf16.mxu1 %v1495_v13 }
  0xa4   :  { %1247 = vmatpush3.bf16.msra.mxu0 %v1361_v19 }
  0xa5   :  { %1248 = vmatprep.subr.bf16.mxu0 %v1495_v13 }
  0xa6   :  { %1267 = vmatpush3.bf16.msra.mxu1 %v1369_v54 }
  0xa7   :  { %1268 = vmatprep.subr.bf16.mxu1 %v1495_v13 }
  0xa8   :  { %1249 = vmatpush3.bf16.msra.mxu0 %v1362_v20 }
  0xaa   :  { %1269 = vmatpush3.bf16.msra.mxu1 %v1370_v55 }
 0x13e   :  { %v1144_v27 = vpop.f32.mrb[0].mxu0 }
 0x13f   :  { %v1166_v28 = vpop.f32.mrb[0].mxu1  ;;  %v1145_v30 = vpop.f32.mrb[1].mxu0 }
 0x140   :  { %v1167_v31 = vpop.f32.mrb[1].mxu1  ;;  %v1146_v32 = vadd.f32 %v1145_v30, %v1144_v27  ;;  %v1147_v34 = vpop.f32.mrb[2].mxu0 }
 0x141   :  { %v1168_v33 = vadd.f32 %v1167_v31, %v1166_v28  ;;  %v1169_v35 = vpop.f32.mrb[2].mxu1  ;;  %v1148_v36 = vpop.f32.mrb[3].mxu0 }
 0x142   :  { %v1170_v37 = vpop.f32.mrb[3].mxu1  ;;  %v667_v38 = vadd.f32 %v1146_v32, %v1037_v29 }
 0x144   :  { %v707_v39 = vadd.f32 %v1168_v33, %v667_v38 }
 0x15e   :  { %v1188_v40 = vpop.f32.mrb[4].mxu0 }
 0x15f   :  { %v1210_v41 = vpop.f32.mrb[4].mxu1  ;;  %v1189_v42 = vpop.f32.mrb[5].mxu0 }
 0x160   :  { %v1211_v43 = vpop.f32.mrb[5].mxu1  ;;  %v1190_v44 = vadd.f32 %v1189_v42, %v1188_v40  ;;  %v1191_v46 = vpop.f32.mrb[6].mxu0 }
 0x161   :  { %v1212_v45 = vadd.f32 %v1211_v43, %v1210_v41  ;;  %v1213_v47 = vpop.f32.mrb[6].mxu1  ;;  %v1192_v48 = vpop.f32.mrb[7].mxu0 }
 0x162   :  { %v1214_v49 = vpop.f32.mrb[7].mxu1  ;;  %v747_v50 = vadd.f32 %v1190_v44, %v707_v39 }
 0x164   :  { %v787_v51 = vadd.f32 %v1212_v45, %v747_v50 }
 0x166   :  { %v792_v52 = vmax.f32 %v787_v51, 0.0 }
 0x168   :  { %v793_v53 = vpack.c.bf16 %v792_v52, %v792_v52 }
 0x16a   :  { %1251 = vmatmul.mubr.bf16.vlgmr.msra.gmra.mrb[8].mxu0 %v793_v53 }
 0x23d   :  { %v899_v57 = vpop.f32.mrb[8].mxu0 }
 0x23e   :  { %v900_v58 = vadd.f32 %v1110_v56, %v899_v57  ;;  %v1252_v59 = vpop.f32.mrb[9].mxu0 }
 0x23f   :  { %v902_v60 = vpop.f32.mrb[10].mxu0 }
 0x240   :  { %v905_v61 = vmax.f32 %v900_v58, 0.0  ;;  %v1253_v62 = vpop.f32.mrb[11].mxu0 }
 0x242   :  { %v906_v63 = vpack.c.bf16 %v905_v61, %v905_v61 }
 0x244   :  { %1271 = vmatmul.mubr.bf16.vlgmr.msra.gmra.mrb[8].mxu1 %v906_v63 }
 0x317   :  { %v1012_v1 = vpop.f32.mrb[8].mxu1 }
 0x318   :  { %v1013_v2 = vadd.f32 %v1119_v0, %v1012_v1  ;;  %v1272_v3 = vpop.f32.mrb[9].mxu1 }
 0x319   :  { %v1015_v4 = vpop.f32.mrb[10].mxu1 }
 0x31a   :  { %v1018_v5 = vpack.c.bf16 %v1013_v2, %v1013_v2  ;;  %v1273_v6 = vpop.f32.mrb[11].mxu1 }
 0x31c   :  { %1019 = vst [vmem:[#allocation10] sm:$0xf] %v1018_v5 }
 0x31d   :  { %1470 = shalt.err (!%p1467_p8)
}
 0x31e   :  { %s1471_s6 = scalar_lea.hbm %s1641_s7, 64 }
 0x31f   :  { %p1472_p9 = scmp.ne.s32.totalorder %s1641_s7, %s1471_s6  ;;  %p1475_p10 = scmp.lt.u32.totalorder %s1471_s6, %s1641_s7 }
 0x321   :  { %p1477_p11 = pnand %p1475_p10, %p1472_p9 }
 0x323   :  { %1480 = shalt.err (!%p1477_p11)
}
 0x324   :  { %1029 = dma.vmem_to_hbm [thread:$0]  %s1027_s29, 64, %s1641_s7, [#allocation4]  }
 0x325   :  { %1487 = dma.done.wait [#allocation4], 64  }
 0x326   :  { %1488 = vsyncadd [#allocation4], 4294967232 }
 0x327   :  { %1033 = vsyncpa [#allocation3], 1 }
 0x328   :  { %1034 = vsyncpa [#allocation6], 1 }
 0x329   :  { %1035 = vsyncpa [#allocation9], 1 }
 0x32a   :  { %1036 = vsyncpa [#allocation4], 1 }

// kernel: mlp_forward.1
= control target key start
LH: loop header
LB: loop body
LE: loop exit
PB: predicated region body
PF: predicated region fallthrough
CT: control target
= control target key end

     0   :  { %12 = vsyncpa [#allocation3], 0  ;;  %s1634_s0 = inlined_call_operand.hbm [shape: bf16[8,1024], index: 0, kind: input, shape index: {}]   ;;  %s1635_s1 = inlined_call_operand.hbm [shape: bf16[1024,128], index: 1, kind: input, shape index: {}]   ;;  %s1636_s2 = inlined_call_operand.vmem [shape: f32[1,128], index: 2, kind: input, shape index: {}]   ;;  %s1637_s3 = inlined_call_operand.hbm [shape: bf16[128,128], index: 3, kind: input, shape index: {}]   ;;  %s1638_s4 = inlined_call_operand.vmem [shape: f32[1,128], index: 4, kind: input, shape index: {}]   ;;  %s1639_s5 = inlined_call_operand.hbm [shape: bf16[128,128], index: 5, kind: input, shape index: {}]   ;;  %s1640_s6 = inlined_call_operand.vmem [shape: f32[1,128], index: 6, kind: input, shape index: {}]   ;;  %s1641_s7 = inlined_call_operand.hbm [shape: bf16[8,128], index: 7, kind: output, shape index: {}]  }
   0x1   :  { %13 = vsyncpa [#allocation6], 0 }
   0x2   :  { %14 = vsyncpa [#allocation9], 0 }
   0x3   :  { %15 = vsyncpa [#allocation4], 0  ;;  %s1489_s24 = smov [#allocation5]   ;;  %s1371_s28 = scalar_lea.hbm %s1635_s1, 8192 }
   0x4   :  { %s31_s25 = sshll.u32 %s1489_s24, 4  ;;  %p1372_p0 = scmp.ne.s32.totalorder %s1635_s1, %s1371_s28  ;;  %s32_s25 = int_to_ptr.vmem [resolvable:$true] %s31_s25 }
   0x5   :  { %p1375_p1 = scmp.lt.u32.totalorder %s1371_s28, %s1635_s1 }
   0x7   :  { %p1377_p2 = pnand %p1375_p1, %p1372_p0 }
   0x9   :  { %1380 = shalt.err (!%p1377_p2)
}
   0xa   :  { %s1381_s10 = scalar_lea.vmem %s32_s25, 8192  ;;  %p1386_p4 = scmp.lt.s32.totalorder %s32_s25, %s32_s25 }
   0xb   :  { %p1382_p3 = scmp.ne.s32.totalorder %s32_s25, %s1381_s10  ;;  %p1387_p5 = scmp.lt.s32.totalorder %s1381_s10, %s1381_s10 }
   0xd   :  { %p1388_p6 = por %p1387_p5, %p1386_p4 }
   0xf   :  { %p1389_p7 = pnand %p1388_p6, %p1382_p3 }
  0x11   :  { %1392 = shalt.err (!%p1389_p7)
}
  0x12   :  { %s1490_s11 = smov 64   ;;  %s1491_s12 = smov 4  }
  0x13   :  { %37 = dma.hbm_to_vmem [thread:$0]  %s1635_s1, 8192, %s32_s25, [#allocation6], %s1490_s11, %s1490_s11, %s1491_s12  }
  0x14   :  { %s1492_s15 = smov [#allocation2]   ;;  %s1493_s17 = smov [#allocation7]  }
  0x15   :  { %s22_s16 = sshll.u32 %s1492_s15, 4  ;;  %s45_s18 = sshll.u32 %s1493_s17, 4  ;;  %s23_s16 = int_to_ptr.vmem [resolvable:$true] %s22_s16  ;;  %s46_s18 = int_to_ptr.vmem [resolvable:$true] %s45_s18 }
  0x16   :  { %s1393_s21 = scalar_lea.hbm %s1634_s0, 512 }
  0x17   :  { %p1394_p8 = scmp.ne.s32.totalorder %s1634_s0, %s1393_s21  ;;  %p1397_p9 = scmp.lt.u32.totalorder %s1393_s21, %s1634_s0 }
  0x19   :  { %p1399_p10 = pnand %p1397_p9, %p1394_p8 }
  0x1b   :  { %1402 = shalt.err (!%p1399_p10)
}
  0x1c   :  { %s1403_s1 = scalar_lea.vmem %s23_s16, 512  ;;  %p1408_p12 = scmp.lt.s32.totalorder %s23_s16, %s23_s16 }
  0x1d   :  { %p1404_p11 = scmp.ne.s32.totalorder %s23_s16, %s1403_s1  ;;  %p1409_p13 = scmp.lt.s32.totalorder %s1403_s1, %s1403_s1 }
  0x1f   :  { %p1410_p0 = por %p1409_p13, %p1408_p12 }
  0x21   :  { %p1411_p1 = pnand %p1410_p0, %p1404_p11 }
  0x23   :  { %1414 = shalt.err (!%p1411_p1)
}
  0x24   :  { %25 = dma.hbm_to_vmem [thread:$0]  %s1634_s0, 512, %s23_s16, [#allocation3]  }
  0x25   :  { %s1415_s30 = scalar_lea.hbm %s1637_s3, 1024 }
  0x26   :  { %p1416_p2 = scmp.ne.s32.totalorder %s1637_s3, %s1415_s30  ;;  %p1419_p3 = scmp.lt.u32.totalorder %s1415_s30, %s1637_s3 }
  0x28   :  { %p1421_p4 = pnand %p1419_p3, %p1416_p2 }
  0x2a   :  { %1424 = shalt.err (!%p1421_p4)
}
  0x2b   :  { %s1425_s14 = scalar_lea.vmem %s46_s18, 1024  ;;  %p1430_p6 = scmp.lt.s32.totalorder %s46_s18, %s46_s18 }
  0x2c   :  { %p1426_p5 = scmp.ne.s32.totalorder %s46_s18, %s1425_s14  ;;  %p1431_p7 = scmp.lt.s32.totalorder %s1425_s14, %s1425_s14 }
  0x2e   :  { %p1432_p8 = por %p1431_p7, %p1430_p6 }
  0x30   :  { %p1433_p9 = pnand %p1432_p8, %p1426_p5 }
  0x32   :  { %1436 = shalt.err (!%p1433_p9)
}
  0x33   :  { %51 = dma.hbm_to_vmem [thread:$0]  %s1637_s3, 1024, %s46_s18, [#allocation6], %s1490_s11, %s1490_s11, %s1491_s12  }
  0x34   :  { %s1494_s16 = smov [#allocation8]   ;;  %s1437_s21 = scalar_lea.hbm %s1639_s5, 1024 }
  0x35   :  { %s59_s17 = sshll.u32 %s1494_s16, 4  ;;  %p1438_p10 = scmp.ne.s32.totalorder %s1639_s5, %s1437_s21  ;;  %s60_s17 = int_to_ptr.vmem [resolvable:$true] %s59_s17 }
  0x36   :  { %p1441_p11 = scmp.lt.u32.totalorder %s1437_s21, %s1639_s5 }
  0x38   :  { %p1443_p12 = pnand %p1441_p11, %p1438_p10 }
  0x3a   :  { %1446 = shalt.err (!%p1443_p12)
}
  0x3b   :  { %s1447_s1 = scalar_lea.vmem %s60_s17, 1024  ;;  %p1452_p0 = scmp.lt.s32.totalorder %s60_s17, %s60_s17 }
  0x3c   :  { %p1448_p13 = scmp.ne.s32.totalorder %s60_s17, %s1447_s1  ;;  %p1453_p1 = scmp.lt.s32.totalorder %s1447_s1, %s1447_s1 }
  0x3e   :  { %p1454_p2 = por %p1453_p1, %p1452_p0 }
  0x40   :  { %p1455_p3 = pnand %p1454_p2, %p1448_p13 }
  0x42   :  { %1458 = shalt.err (!%p1455_p3)
}
  0x43   :  { %65 = dma.hbm_to_vmem [thread:$0]  %s1639_s5, 1024, %s60_s17, [#allocation9], %s1490_s11, %s1490_s11, %s1491_s12  }
  0x44   :  { %1481 = dma.done.wait [#allocation3], 512  }
  0x45   :  { %1482 = vsyncadd [#allocation3], 4294966784 }
  0x46   :  { %1483 = dma.done.wait [#allocation6], 9216  }
  0x47   :  { %1484 = vsyncadd [#allocation6], 4294958080 }
  0x48   :  { %1485 = dma.done.wait [#allocation9], 1024  }
  0x49   :  { %1486 = vsyncadd [#allocation9], 4294966272  ;;  %v1283_v0 = vld [vmem:[#allocation5 + $0x40] sm:$0xff]   ;;  %v1287_v4 = vld [vmem:[#allocation5 + $0x48] sm:$0xff]   ;;  %vm1496_vm0 = vmmov 0   ;;  %s1497_s28 = smov [#allocation10]  }
  0x4a   :  { %v1284_v1 = vld [vmem:[#allocation5 + $0xc0] sm:$0xff]   ;;  %1128 = vmatprep.subr.bf16.mxu0 %v1283_v0  ;;  %v1288_v5 = vld [vmem:[#allocation5 + $0xc8] sm:$0xff]   ;;  %v1291_v8 = vld [vmem:[#allocation5 + $0x50] sm:$0xff]   ;;  %s1026_s29 = sshll.u32 %s1497_s28, 4  ;;  %s1027_s29 = int_to_ptr.vmem [resolvable:$true] %s1026_s29 }
  0x4b   :  { %v1285_v2 = vld [vmem:[#allocation5] sm:$0xff]   ;;  %1150 = vmatprep.subr.bf16.mxu1 %v1284_v1  ;;  %v1289_v6 = vld [vmem:[#allocation5 + $0x8] sm:$0xff]   ;;  %v1292_v9 = vld [vmem:[#allocation5 + $0xd0] sm:$0xff]   ;;  %p1464_p5 = scmp.lt.s32.totalorder %s1027_s29, %s1027_s29 }
  0x4c   :  { %v1286_v3 = vld [vmem:[#allocation5 + $0x80] sm:$0xff]   ;;  %1129 = vmatpush3.bf16.msra.mxu0 %v1285_v2  ;;  %v1290_v7 = vld [vmem:[#allocation5 + $0x88] sm:$0xff]   ;;  %v1293_v10 = vld [vmem:[#allocation5 + $0x10] sm:$0xff]  }
  0x4d   :  { %1151 = vmatpush3.bf16.msra.mxu1 %v1286_v3  ;;  %1130 = vmatprep.subr.bf16.mxu0 %v1287_v4  ;;  %v1294_v11 = vld [vmem:[#allocation5 + $0x90] sm:$0xff]   ;;  %v1295_v12 = vld [vmem:[#allocation5 + $0x58] sm:$0xff]   ;;  %v1299_v16 = vld [vmem:[#allocation5 + $0x60] sm:$0xff]  }
  0x4e   :  { %1152 = vmatprep.subr.bf16.mxu1 %v1288_v5  ;;  %v1296_v13 = vld [vmem:[#allocation5 + $0xd8] sm:$0xff]   ;;  %v1300_v17 = vld [vmem:[#allocation5 + $0xe0] sm:$0xff]   ;;  %v1303_v20 = vld [vmem:[#allocation5 + $0x68] sm:$0xff]  }
  0x4f   :  { %v1297_v14 = vld [vmem:[#allocation5 + $0x18] sm:$0xff]   ;;  %v1301_v18 = vld [vmem:[#allocation5 + $0x20] sm:$0xff]   ;;  %v1304_v21 = vld [vmem:[#allocation5 + $0xe8] sm:$0xff]  }
  0x50   :  { %1131 = vmatpush3.bf16.msra.mxu0 %v1289_v6  ;;  %v1298_v15 = vld [vmem:[#allocation5 + $0x98] sm:$0xff]   ;;  %v1302_v19 = vld [vmem:[#allocation5 + $0xa0] sm:$0xff]   ;;  %v1305_v22 = vld [vmem:[#allocation5 + $0x28] sm:$0xff]  }
  0x51   :  { %1153 = vmatpush3.bf16.msra.mxu1 %v1290_v7  ;;  %1132 = vmatprep.subr.bf16.mxu0 %v1291_v8  ;;  %v1306_v23 = vld [vmem:[#allocation5 + $0xa8] sm:$0xff]   ;;  %v1307_v24 = vld [vmem:[#allocation5 + $0x70] sm:$0xff]   ;;  %v1311_v28 = vld [vmem:[#allocation5 + $0x78] sm:$0xff]  }
  0x52   :  { %1154 = vmatprep.subr.bf16.mxu1 %v1292_v9  ;;  %v1308_v25 = vld [vmem:[#allocation5 + $0xf0] sm:$0xff]   ;;  %v1312_v29 = vld [vmem:[#allocation5 + $0xf8] sm:$0xff]   ;;  %v81_v32 = vld [vmem:[#allocation2] sm:$0xff] }
  0x53   :  { %v1309_v26 = vld [vmem:[#allocation5 + $0x30] sm:$0xff]   ;;  %v1313_v30 = vld [vmem:[#allocation5 + $0x38] sm:$0xff]   ;;  %v82_v33 = vld [vmem:[#allocation2 + $0x8] sm:$0xff]  ;;  %v1038_v34 = vcombine.low %v81_v32, %v81_v32  ;;  %v1039_v35 = vcombine.high %v81_v32, %v81_v32 }
  0x54   :  { %1133 = vmatpush3.bf16.msra.mxu0 %v1293_v10  ;;  %v1310_v27 = vld [vmem:[#allocation5 + $0xb0] sm:$0xff]   ;;  %v1314_v31 = vld [vmem:[#allocation5 + $0xb8] sm:$0xff]   ;;  %v1040_v36 = vcombine.low %v82_v33, %v82_v33  ;;  %v1041_v37 = vcombine.high %v82_v33, %v82_v33  ;;  %v1319_v38 = vld [vmem:[#allocation5 + $0x140] sm:$0xff]  }
  0x55   :  { %1155 = vmatpush3.bf16.msra.mxu1 %v1294_v11  ;;  %1134 = vmatprep.subr.bf16.mxu0 %v1295_v12  ;;  %v1320_v39 = vld [vmem:[#allocation5 + $0x1c0] sm:$0xff]   ;;  %v1323_v42 = vld [vmem:[#allocation5 + $0x148] sm:$0xff]   ;;  %v1327_v46 = vld [vmem:[#allocation5 + $0x150] sm:$0xff]  }
  0x56   :  { %1156 = vmatprep.subr.bf16.mxu1 %v1296_v13  ;;  %664 = vmatprep.mubr.bf16.mxu0 %v1039_v35  ;;  %v1321_v40 = vld [vmem:[#allocation5 + $0x100] sm:$0xff]   ;;  %v1324_v43 = vld [vmem:[#allocation5 + $0x1c8] sm:$0xff]   ;;  %v1328_v47 = vld [vmem:[#allocation5 + $0x1d0] sm:$0xff]   ;;  %v1495_v13 = vmov 0.0  }
  0x57   :  { %704 = vmatprep.mubr.bf16.mxu1 %v1041_v37  ;;  %v1322_v41 = vld [vmem:[#allocation5 + $0x180] sm:$0xff]   ;;  %v1325_v44 = vld [vmem:[#allocation5 + $0x108] sm:$0xff]   ;;  %v1329_v48 = vld [vmem:[#allocation5 + $0x110] sm:$0xff]  }
  0x58   :  { %1135 = vmatpush3.bf16.msra.mxu0 %v1297_v14  ;;  %v1326_v45 = vld [vmem:[#allocation5 + $0x188] sm:$0xff]   ;;  %v1330_v49 = vld [vmem:[#allocation5 + $0x190] sm:$0xff]   ;;  %v1331_v50 = vld [vmem:[#allocation5 + $0x158] sm:$0xff]  }
  0x59   :  { %1157 = vmatpush3.bf16.msra.mxu1 %v1298_v15  ;;  %1136 = vmatprep.subr.bf16.mxu0 %v1299_v16  ;;  %v1332_v51 = vld [vmem:[#allocation5 + $0x1d8] sm:$0xff]   ;;  %v1335_v54 = vld [vmem:[#allocation5 + $0x160] sm:$0xff]   ;;  %v1339_v58 = vld [vmem:[#allocation5 + $0x168] sm:$0xff]  }
  0x5a   :  { %1158 = vmatprep.subr.bf16.mxu1 %v1300_v17  ;;  %v1333_v52 = vld [vmem:[#allocation5 + $0x118] sm:$0xff]   ;;  %v1336_v55 = vld [vmem:[#allocation5 + $0x1e0] sm:$0xff]   ;;  %v1340_v59 = vld [vmem:[#allocation5 + $0x1e8] sm:$0xff]  }
  0x5b   :  { %v1334_v53 = vld [vmem:[#allocation5 + $0x198] sm:$0xff]   ;;  %v1337_v56 = vld [vmem:[#allocation5 + $0x120] sm:$0xff]   ;;  %v1341_v60 = vld [vmem:[#allocation5 + $0x128] sm:$0xff]  }
  0x5c   :  { %1137 = vmatpush3.bf16.msra.mxu0 %v1301_v18  ;;  %v1338_v57 = vld [vmem:[#allocation5 + $0x1a0] sm:$0xff]   ;;  %v1342_v61 = vld [vmem:[#allocation5 + $0x1a8] sm:$0xff]   ;;  %v1343_v62 = vld [vmem:[#allocation5 + $0x170] sm:$0xff]  }
  0x5d   :  { %1159 = vmatpush3.bf16.msra.mxu1 %v1302_v19  ;;  %1138 = vmatprep.subr.bf16.mxu0 %v1303_v20  ;;  %v1344_v63 = vld [vmem:[#allocation5 + $0x1f0] sm:$0xff]   ;;  %v1347_v2 = vld [vmem:[#allocation5 + $0x178] sm:$0xff]   ;;  %v1355_v12 = vld [vmem:[#allocation7] sm:$0xff]  }
  0x5e   :  { %1160 = vmatprep.subr.bf16.mxu1 %v1304_v21  ;;  %v1345_v0 = vld [vmem:[#allocation5 + $0x130] sm:$0xff]   ;;  %v1348_v3 = vld [vmem:[#allocation5 + $0x1f8] sm:$0xff]   ;;  %v1356_v14 = vld [vmem:[#allocation7 + $0x8] sm:$0xff]  }
  0x5f   :  { %v1346_v1 = vld [vmem:[#allocation5 + $0x1b0] sm:$0xff]   ;;  %v1349_v4 = vld [vmem:[#allocation5 + $0x138] sm:$0xff]   ;;  %v1359_v17 = vld [vmem:[#allocation7 + $0x20] sm:$0xff]  }
  0x60   :  { %1139 = vmatpush3.bf16.msra.mxu0 %v1305_v22  ;;  %v1350_v5 = vld [vmem:[#allocation5 + $0x1b8] sm:$0xff]   ;;  %v83_v6 = vld [vmem:[#allocation2 + $0x10] sm:$0xff]  ;;  %v1360_v18 = vld [vmem:[#allocation7 + $0x28] sm:$0xff]  }
  0x61   :  { %1161 = vmatpush3.bf16.msra.mxu1 %v1306_v23  ;;  %1140 = vmatprep.subr.bf16.mxu0 %v1307_v24  ;;  %v1042_v7 = vcombine.low %v83_v6, %v83_v6  ;;  %v1043_v8 = vcombine.high %v83_v6, %v83_v6  ;;  %v84_v9 = vld [vmem:[#allocation2 + $0x18] sm:$0xff]  ;;  %v1357_v15 = vld [vmem:[#allocation7 + $0x10] sm:$0xff]   ;;  %v1363_v21 = vld [vmem:[#allocation8] sm:$0xff]  }
  0x62   :  { %1162 = vmatprep.subr.bf16.mxu1 %v1308_v25  ;;  %v1044_v10 = vcombine.low %v84_v9, %v84_v9  ;;  %v1045_v11 = vcombine.high %v84_v9, %v84_v9  ;;  %v1358_v16 = vld [vmem:[#allocation7 + $0x18] sm:$0xff]   ;;  %v1361_v19 = vld [vmem:[#allocation7 + $0x30] sm:$0xff]   ;;  %v1364_v22 = vld [vmem:[#allocation8 + $0x8] sm:$0xff]  }
  0x63   :  { %v1362_v20 = vld [vmem:[#allocation7 + $0x38] sm:$0xff]   ;;  %v1365_v23 = vld [vmem:[#allocation8 + $0x10] sm:$0xff]   ;;  %v1367_v25 = vld [vmem:[#allocation8 + $0x20] sm:$0xff]  }
  0x64   :  { %1141 = vmatpush3.bf16.msra.mxu0 %v1309_v26  ;;  %v1366_v24 = vld [vmem:[#allocation8 + $0x18] sm:$0xff]   ;;  %v1368_v26 = vld [vmem:[#allocation8 + $0x28] sm:$0xff]  }
  0x65   :  { %1163 = vmatpush3.bf16.msra.mxu1 %v1310_v27  ;;  %1142 = vmatprep.subr.bf16.mxu0 %v1311_v28 }
  0x66   :  { %1164 = vmatprep.subr.bf16.mxu1 %v1312_v29  ;;  %v1037_v29 = vld [vmem:[%s1636_s2] ss:$0 sm:$0xff] }
  0x68   :  { %1143 = vmatpush3.bf16.msra.mxu0 %v1313_v30 }
  0x69   :  { %1165 = vmatpush3.bf16.msra.mxu1 %v1314_v31  ;;  %1172 = vmatprep.subr.bf16.mxu0 %v1319_v38 }
  0x6a   :  { %1194 = vmatprep.subr.bf16.mxu1 %v1320_v39 }
  0x6b   :  { %665 = vmatmul.mubr.bf16.vlgmr.msra.gmra.mrb[0].mxu0 %v1038_v34 }
  0x6c   :  { %705 = vmatmul.mubr.bf16.vlgmr.msra.gmra.mrb[0].mxu1 %v1040_v36  ;;  %1173 = vmatpush3.bf16.msra.mxu0 %v1321_v40 }
  0x6d   :  { %1195 = vmatpush3.bf16.msra.mxu1 %v1322_v41  ;;  %1174 = vmatprep.subr.bf16.mxu0 %v1323_v42 }
  0x6e   :  { %1196 = vmatprep.subr.bf16.mxu1 %v1324_v43  ;;  %744 = vmatprep.mubr.bf16.mxu0 %v1043_v8 }
  0x6f   :  { %784 = vmatprep.mubr.bf16.mxu1 %v1045_v11 }
  0x70   :  { %1175 = vmatpush3.bf16.msra.mxu0 %v1325_v44 }
  0x71   :  { %1197 = vmatpush3.bf16.msra.mxu1 %v1326_v45  ;;  %1176 = vmatprep.subr.bf16.mxu0 %v1327_v46 }
  0x72   :  { %1198 = vmatprep.subr.bf16.mxu1 %v1328_v47 }
  0x74   :  { %1177 = vmatpush3.bf16.msra.mxu0 %v1329_v48 }
  0x75   :  { %1199 = vmatpush3.bf16.msra.mxu1 %v1330_v49  ;;  %1178 = vmatprep.subr.bf16.mxu0 %v1331_v50 }
  0x76   :  { %1200 = vmatprep.subr.bf16.mxu1 %v1332_v51 }
  0x78   :  { %1179 = vmatpush3.bf16.msra.mxu0 %v1333_v52 }
  0x79   :  { %1201 = vmatpush3.bf16.msra.mxu1 %v1334_v53  ;;  %1180 = vmatprep.subr.bf16.mxu0 %v1335_v54  ;;  %v1369_v54 = vld [vmem:[#allocation8 + $0x30] sm:$0xff]  }
  0x7a   :  { %1202 = vmatprep.subr.bf16.mxu1 %v1336_v55  ;;  %v1370_v55 = vld [vmem:[#allocation8 + $0x38] sm:$0xff]  }
  0x7c   :  { %1181 = vmatpush3.bf16.msra.mxu0 %v1337_v56  ;;  %v1110_v56 = vld [vmem:[%s1638_s4] ss:$0 sm:$0xff]  ;;  %s1459_s4 = scalar_lea.vmem %s1027_s29, 64 }
  0x7d   :  { %1203 = vmatpush3.bf16.msra.mxu1 %v1338_v57  ;;  %1182 = vmatprep.subr.bf16.mxu0 %v1339_v58  ;;  %p1460_p4 = scmp.ne.s32.totalorder %s1027_s29, %s1459_s4  ;;  %p1465_p6 = scmp.lt.s32.totalorder %s1459_s4, %s1459_s4 }
  0x7e   :  { %1204 = vmatprep.subr.bf16.mxu1 %v1340_v59 }
  0x7f   :  { %p1466_p7 = por %p1465_p6, %p1464_p5 }
  0x80   :  { %1183 = vmatpush3.bf16.msra.mxu0 %v1341_v60 }
  0x81   :  { %1205 = vmatpush3.bf16.msra.mxu1 %v1342_v61  ;;  %1184 = vmatprep.subr.bf16.mxu0 %v1343_v62  ;;  %p1467_p8 = pnand %p1466_p7, %p1460_p4 }
  0x82   :  { %1206 = vmatprep.subr.bf16.mxu1 %v1344_v63 }
  0x84   :  { %1185 = vmatpush3.bf16.msra.mxu0 %v1345_v0  ;;  %v1119_v0 = vld [vmem:[%s1640_s6] ss:$0 sm:$0xff] }
  0x85   :  { %1207 = vmatpush3.bf16.msra.mxu1 %v1346_v1  ;;  %1186 = vmatprep.subr.bf16.mxu0 %v1347_v2 }
  0x86   :  { %1208 = vmatprep.subr.bf16.mxu1 %v1348_v3 }
  0x88   :  { %1187 = vmatpush3.bf16.msra.mxu0 %v1349_v4 }
  0x89   :  { %1209 = vmatpush3.bf16.msra.mxu1 %v1350_v5  ;;  %1234 = vmatprep.subr.bf16.mxu0 %v1495_v13 }
  0x8a   :  { %1254 = vmatprep.subr.bf16.mxu1 %v1495_v13 }
  0x8b   :  { %745 = vmatmul.mubr.bf16.vlgmr.msra.gmra.mrb[4].mxu0 %v1042_v7 }
  0x8c   :  { %785 = vmatmul.mubr.bf16.vlgmr.msra.gmra.mrb[4].mxu1 %v1044_v10  ;;  %1235 = vmatpush3.bf16.msra.mxu0 %v1355_v12 }
  0x8d   :  { %1236 = vmatprep.subr.bf16.mxu0 %v1495_v13  ;;  %1250 = vmatprep.mubr.msk.bf16.mxu0 %vm1496_vm0, %v1495_v13 }
  0x8e   :  { %1270 = vmatprep.mubr.msk.bf16.mxu1 %vm1496_vm0, %v1495_v13  ;;  %1255 = vmatpush3.bf16.msra.mxu1 %v1363_v21 }
  0x8f   :  { %1256 = vmatprep.subr.bf16.mxu1 %v1495_v13 }
  0x90   :  { %1237 = vmatpush3.bf16.msra.mxu0 %v1356_v14 }
  0x91   :  { %1238 = vmatprep.subr.bf16.mxu0 %v1495_v13 }
  0x92   :  { %1257 = vmatpush3.bf16.msra.mxu1 %v1364_v22 }
  0x93   :  { %1258 = vmatprep.subr.bf16.mxu1 %v1495_v13 }
  0x94   :  { %1239 = vmatpush3.bf16.msra.mxu0 %v1357_v15 }
  0x95   :  { %1240 = vmatprep.subr.bf16.mxu0 %v1495_v13 }
  0x96   :  { %1259 = vmatpush3.bf16.msra.mxu1 %v1365_v23 }
  0x97   :  { %1260 = vmatprep.subr.bf16.mxu1 %v1495_v13 }
  0x98   :  { %1241 = vmatpush3.bf16.msra.mxu0 %v1358_v16 }
  0x99   :  { %1242 = vmatprep.subr.bf16.mxu0 %v1495_v13 }
  0x9a   :  { %1261 = vmatpush3.bf16.msra.mxu1 %v1366_v24 }
  0x9b   :  { %1262 = vmatprep.subr.bf16.mxu1 %v1495_v13 }
  0x9c   :  { %1243 = vmatpush3.bf16.msra.mxu0 %v1359_v17 }
  0x9d   :  { %1244 = vmatprep.subr.bf16.mxu0 %v1495_v13 }
  0x9e   :  { %1263 = vmatpush3.bf16.msra.mxu1 %v1367_v25 }
  0x9f   :  { %1264 = vmatprep.subr.bf16.mxu1 %v1495_v13 }
  0xa0   :  { %1245 = vmatpush3.bf16.msra.mxu0 %v1360_v18 }
  0xa1   :  { %1246 = vmatprep.subr.bf16.mxu0 %v1495_v13 }
  0xa2   :  { %1265 = vmatpush3.bf16.msra.mxu1 %v1368_v26 }
  0xa3   :  { %1266 = vmatprep.subr.bf16.mxu1 %v1495_v13 }
  0xa4   :  { %1247 = vmatpush3.bf16.msra.mxu0 %v1361_v19 }
  0xa5   :  { %1248 = vmatprep.subr.bf16.mxu0 %v1495_v13 }
  0xa6   :  { %1267 = vmatpush3.bf16.msra.mxu1 %v1369_v54 }
  0xa7   :  { %1268 = vmatprep.subr.bf16.mxu1 %v1495_v13 }
  0xa8   :  { %1249 = vmatpush3.bf16.msra.mxu0 %v1362_v20 }
  0xaa   :  { %1269 = vmatpush3.bf16.msra.mxu1 %v1370_v55 }
 0x13e   :  { %v1144_v27 = vpop.f32.mrb[0].mxu0 }
 0x13f   :  { %v1166_v28 = vpop.f32.mrb[0].mxu1  ;;  %v1145_v30 = vpop.f32.mrb[1].mxu0 }
 0x140   :  { %v1167_v31 = vpop.f32.mrb[1].mxu1  ;;  %v1146_v32 = vadd.f32 %v1145_v30, %v1144_v27  ;;  %v1147_v34 = vpop.f32.mrb[2].mxu0 }
 0x141   :  { %v1168_v33 = vadd.f32 %v1167_v31, %v1166_v28  ;;  %v1169_v35 = vpop.f32.mrb[2].mxu1  ;;  %v1148_v36 = vpop.f32.mrb[3].mxu0 }
 0x142   :  { %v1170_v37 = vpop.f32.mrb[3].mxu1  ;;  %v667_v38 = vadd.f32 %v1146_v32, %v1037_v29 }
 0x144   :  { %v707_v39 = vadd.f32 %v1168_v33, %v667_v38 }
 0x15e   :  { %v1188_v40 = vpop.f32.mrb[4].mxu0 }
 0x15f   :  { %v1210_v41 = vpop.f32.mrb[4].mxu1  ;;  %v1189_v42 = vpop.f32.mrb[5].mxu0 }
 0x160   :  { %v1211_v43 = vpop.f32.mrb[5].mxu1  ;;  %v1190_v44 = vadd.f32 %v1189_v42, %v1188_v40  ;;  %v1191_v46 = vpop.f32.mrb[6].mxu0 }
 0x161   :  { %v1212_v45 = vadd.f32 %v1211_v43, %v1210_v41  ;;  %v1213_v47 = vpop.f32.mrb[6].mxu1  ;;  %v1192_v48 = vpop.f32.mrb[7].mxu0 }
 0x162   :  { %v1214_v49 = vpop.f32.mrb[7].mxu1  ;;  %v747_v50 = vadd.f32 %v1190_v44, %v707_v39 }
 0x164   :  { %v787_v51 = vadd.f32 %v1212_v45, %v747_v50 }
 0x166   :  { %v792_v52 = vmax.f32 %v787_v51, 0.0 }
 0x168   :  { %v793_v53 = vpack.c.bf16 %v792_v52, %v792_v52 }
 0x16a   :  { %1251 = vmatmul.mubr.bf16.vlgmr.msra.gmra.mrb[8].mxu0 %v793_v53 }
 0x23d   :  { %v899_v57 = vpop.f32.mrb[8].mxu0 }
 0x23e   :  { %v900_v58 = vadd.f32 %v1110_v56, %v899_v57  ;;  %v1252_v59 = vpop.f32.mrb[9].mxu0 }
 0x23f   :  { %v902_v60 = vpop.f32.mrb[10].mxu0 }
 0x240   :  { %v905_v61 = vmax.f32 %v900_v58, 0.0  ;;  %v1253_v62 = vpop.f32.mrb[11].mxu0 }
 0x242   :  { %v906_v63 = vpack.c.bf16 %v905_v61, %v905_v61 }
 0x244   :  { %1271 = vmatmul.mubr.bf16.vlgmr.msra.gmra.mrb[8].mxu1 %v906_v63 }
 0x317   :  { %v1012_v1 = vpop.f32.mrb[8].mxu1 }
 0x318   :  { %v1013_v2 = vadd.f32 %v1119_v0, %v1012_v1  ;;  %v1272_v3 = vpop.f32.mrb[9].mxu1 }
 0x319   :  { %v1015_v4 = vpop.f32.mrb[10].mxu1 }
 0x31a   :  { %v1018_v5 = vpack.c.bf16 %v1013_v2, %v1013_v2  ;;  %v1273_v6 = vpop.f32.mrb[11].mxu1 }
 0x31c   :  { %1019 = vst [vmem:[#allocation10] sm:$0xf] %v1018_v5 }
 0x31d   :  { %1470 = shalt.err (!%p1467_p8)
}
 0x31e   :  { %s1471_s6 = scalar_lea.hbm %s1641_s7, 64 }
 0x31f   :  { %p1472_p9 = scmp.ne.s32.totalorder %s1641_s7, %s1471_s6  ;;  %p1475_p10 = scmp.lt.u32.totalorder %s1471_s6, %s1641_s7 }
 0x321   :  { %p1477_p11 = pnand %p1475_p10, %p1472_p9 }
 0x323   :  { %1480 = shalt.err (!%p1477_p11)
}
 0x324   :  { %1029 = dma.vmem_to_hbm [thread:$0]  %s1027_s29, 64, %s1641_s7, [#allocation4]  }
 0x325   :  { %1487 = dma.done.wait [#allocation4], 64  }
 0x326   :  { %1488 = vsyncadd [#allocation4], 4294967232 }
 0x327   :  { %1033 = vsyncpa [#allocation3], 1 }
 0x328   :  { %1034 = vsyncpa [#allocation6], 1 }
 0x329   :  { %1035 = vsyncpa [#allocation9], 1 }
 0x32a   :  { %1036 = vsyncpa [#allocation4], 1 }

</bundles_post_ra>
